<compile_context>
chip_gen: v7x
topology: tpu7x:2x2x1
jax: 0.10.0
libtpu: 0.0.40
codegen_flags: <defaults>
</compile_context>

<pallas_src>
import functools

import jax
import jax.numpy as jnp
from jax.experimental import pallas as pl
from jax.experimental.pallas import tpu as pltpu


def _round_up(v: int, m: int) -> int:
    return ((v + m - 1) // m) * m


_DEFAULT_TM = 512
_DEFAULT_TN = 512
_DEFAULT_TK = 2048


def _device_kind() -> str:
    try:
        return jax.devices()[0].device_kind.lower()
    except Exception:  # pragma: no cover - defensive only
        return ""


@functools.lru_cache(maxsize=None)
def _vmem_limit_bytes() -> int:
    """Chip-aware scoped-VMEM limit: ~96 MiB on 128 MiB chips, ~48 MiB on v7x."""
    cap = 128 * 1024 * 1024
    try:
        cap = int(pltpu.get_tpu_info().vmem_capacity_bytes)
    except Exception:  # pragma: no cover - defensive only
        pass
    return min(96 * 1024 * 1024, (cap * 3) // 4)


# -----------------------------------------------------------------------------
# VMEM footprint models (double-buffered BlockSpec tiles)
# -----------------------------------------------------------------------------
def _tiled_footprint(tm: int, tn: int, tk: int, itemsize: int, k_blocks: int) -> int:
    buf = 2 * (tm * tk + tk * tn + tm * tn) * itemsize
    acc = tm * tn * 4 if k_blocks > 1 else 0
    return buf + acc


def _resident_footprint(tm: int, Dp: int, Kp: int, itemsize: int, w_buffers: int) -> int:
    return (w_buffers * Dp * Kp + 2 * tm * Dp + 2 * tm * Kp) * itemsize


# -----------------------------------------------------------------------------
# Kernels (W is pre-transposed to (D, K) in the wrapper)
# -----------------------------------------------------------------------------
def _resident_w_kernel(x_ref, wt_ref, o_ref):
    """x_ref: (tm, Dp)   wt_ref: (Dp, Kp) VMEM-resident   o_ref: (tm, Kp)."""
    o_ref[...] = jnp.dot(
        x_ref[...], wt_ref[...], preferred_element_type=jnp.float32
    ).astype(o_ref.dtype)


def _tiled_single_k_kernel(x_ref, wt_ref, o_ref):
    """Full-D reduction block: no accumulator, no init/finalize."""
    o_ref[...] = jnp.dot(
        x_ref[...], wt_ref[...], preferred_element_type=jnp.float32
    ).astype(o_ref.dtype)


def _tiled_acc_kernel(x_ref, wt_ref, o_ref, acc_ref):
    """General tiled matmul, f32 accumulator over the D (last grid) axis."""
    @pl.when(pl.program_id(2) == 0)
    def _():
        acc_ref[...] = jnp.zeros_like(acc_ref)

    acc_ref[...] += jnp.dot(
        x_ref[...], wt_ref[...], preferred_element_type=jnp.float32
    )

    @pl.when(pl.program_id(2) == pl.num_programs(2) - 1)
    def _():
        o_ref[...] = acc_ref[...].astype(o_ref.dtype)


# -----------------------------------------------------------------------------
# pallas_call wrappers
# -----------------------------------------------------------------------------
def _call_resident(xp, wt, B, Dp, Kp, tm, out_dtype, vmem_limit, single_buffer_w):
    itemsize = jnp.dtype(xp.dtype).itemsize
    w_kwargs = {}
    if single_buffer_w:
        # The W block never changes (constant index_map): one buffer suffices.
        w_kwargs = dict(pipeline_mode=pl.Buffered(1))
    cost = pl.CostEstimate(
        flops=2 * B * Kp * Dp, transcendentals=0,
        bytes_accessed=(B * Dp + Dp * Kp + B * Kp) * itemsize)
    return pl.pallas_call(
        _resident_w_kernel,
        out_shape=jax.ShapeDtypeStruct((B, Kp), out_dtype),
        grid_spec=pltpu.PrefetchScalarGridSpec(
            num_scalar_prefetch=0,
            grid=(pl.cdiv(B, tm),),
            in_specs=[
                pl.BlockSpec((tm, Dp), lambda i: (i, 0)),
                pl.BlockSpec((Dp, Kp), lambda i: (0, 0), **w_kwargs),
            ],
            out_specs=pl.BlockSpec((tm, Kp), lambda i: (i, 0)),
        ),
        compiler_params=pltpu.CompilerParams(
            dimension_semantics=("parallel",),
            vmem_limit_bytes=vmem_limit),
        cost_estimate=cost,
    )(xp, wt)


def _call_tiled(xp, wt, B, Dp, Kp, tm, tn, tk, out_dtype, vmem_limit):
    itemsize = jnp.dtype(xp.dtype).itemsize
    grid_m = pl.cdiv(B, tm)
    grid_n = pl.cdiv(Kp, tn)
    grid_k = Dp // tk
    cost = pl.CostEstimate(
        flops=2 * B * Kp * Dp, transcendentals=0,
        bytes_accessed=(B * Dp * (grid_n if grid_k > 1 else 1)
                        + Dp * Kp * grid_m
                        + B * Kp) * itemsize)
    if grid_k == 1:
        # Single reduction block: the x block index (i, 0) is constant across j,
        # so Pallas skips the x re-DMA; no accumulator scratch needed.
        return pl.pallas_call(
            _tiled_single_k_kernel,
            out_shape=jax.ShapeDtypeStruct((B, Kp), out_dtype),
            grid_spec=pltpu.PrefetchScalarGridSpec(
                num_scalar_prefetch=0,
                grid=(grid_m, grid_n),
                in_specs=[
                    pl.BlockSpec((tm, Dp), lambda i, j: (i, 0)),
                    pl.BlockSpec((Dp, tn), lambda i, j: (0, j)),
                ],
                out_specs=pl.BlockSpec((tm, tn), lambda i, j: (i, j)),
            ),
            compiler_params=pltpu.CompilerParams(
                dimension_semantics=("parallel", "parallel"),
                vmem_limit_bytes=vmem_limit),
            cost_estimate=cost,
        )(xp, wt)
    return pl.pallas_call(
        _tiled_acc_kernel,
        out_shape=jax.ShapeDtypeStruct((B, Kp), out_dtype),
        grid_spec=pltpu.PrefetchScalarGridSpec(
            num_scalar_prefetch=0,
            grid=(grid_m, grid_n, grid_k),
            in_specs=[
                pl.BlockSpec((tm, tk), lambda i, j, k: (i, k)),
                pl.BlockSpec((tk, tn), lambda i, j, k: (k, j)),
            ],
            out_specs=pl.BlockSpec((tm, tn), lambda i, j, k: (i, j)),
            scratch_shapes=[pltpu.VMEM((tm, tn), jnp.float32)],
        ),
        compiler_params=pltpu.CompilerParams(
            dimension_semantics=("parallel", "parallel", "arbitrary"),
            vmem_limit_bytes=vmem_limit),
        cost_estimate=cost,
    )(xp, wt)


# -----------------------------------------------------------------------------
# Tile selection
# -----------------------------------------------------------------------------
def _choose_dp_tk(D, Dp0, tm, tn, itemsize, budget):
    """Pick (padded D, tk). Prefer a single full-D reduction block."""
    if _tiled_footprint(tm, tn, Dp0, itemsize, 1) <= budget:
        return Dp0, Dp0
    # Largest 128-multiple tk <= _DEFAULT_TK that divides Dp0 (no extra D pad).
    tk = 128
    for g in range(Dp0 // 128, 0, -1):
        cand = 128 * g
        if cand > _DEFAULT_TK:
            continue
        if Dp0 % cand == 0:
            tk = cand
            break
    Dp = Dp0
    if tk < 1024:
        # Poor divisor structure: pad D a bit further to enable a large tk.
        tk = min(_DEFAULT_TK, Dp0)
        Dp = _round_up(D, tk)
    while _tiled_footprint(tm, tn, tk, itemsize, 2) > budget and tk > 256:
        tk = max(256, _round_up(tk // 2, 128))
        Dp = _round_up(D, tk)
    return Dp, tk


# -----------------------------------------------------------------------------
# Public wrapper
# -----------------------------------------------------------------------------
def stiefel_dictionary_forward(x: jax.Array, weight: jax.Array, *,
                               tm: int | None = None,
                               tn: int | None = None,
                               tk: int | None = None,
                               force_tiled: bool = False,
                               compute_dtype=None) -> jax.Array:
    """Pallas equivalent of `orthogonal(nn.Linear(input_dim, dict_size))(x)`.

    Args:
      x:      (batch, input_dim)
      weight: (dict_size, input_dim), orthonormal rows (W @ W.T == I).
      compute_dtype: optional reduced-precision MXU input dtype (e.g. bf16 on
        v6e/v7x); accumulation stays f32 inside the kernels.
    Returns:
      (batch, dict_size) = x @ weight.T
    """
    B, D = x.shape
    K, Dw = weight.shape
    assert D == Dw, "weight must be (dict_size, input_dim)"

    out_dtype = x.dtype
    if compute_dtype is not None:
        x = x.astype(compute_dtype)
        weight = weight.astype(compute_dtype)

    itemsize = jnp.dtype(x.dtype).itemsize
    vmem_limit = _vmem_limit_bytes()
    budget = (vmem_limit * 9) // 10
    is_v7 = "v7" in _device_kind()

    Kp = _round_up(K, 128)
    Dp = _round_up(D, 128)

    # Batch tile: never pad B; Pallas masks the ragged last block.
    tm_eff = min(tm if tm is not None else _DEFAULT_TM, _round_up(B, 8))
    tm_eff = max(8, _round_up(tm_eff, 8))

    # ------------------------------------------------------------ resident path
    if not force_tiled:
        tm_res = tm_eff
        # v7x: keep >= 2 parallel batch blocks so both TensorCores get work.
        if is_v7 and B >= 64 and pl.cdiv(B, tm_res) < 2:
            tm_res = max(8, _round_up(pl.cdiv(B, 2), 8))
        res_budget = (budget * 3) // 4
        # Gate on FULL footprint, conservatively assuming 2 W buffers.
        while (_resident_footprint(tm_res, Dp, Kp, itemsize, 2) > res_budget
               and tm_res > 128):
            tm_res = max(128, _round_up(tm_res // 2, 8))
        if _resident_footprint(tm_res, Dp, Kp, itemsize, 2) <= res_budget:
            xp = x if Dp == D else jnp.pad(x, ((0, 0), (0, Dp - D)))
            wpad = (weight if (Kp == K and Dp == D)
                    else jnp.pad(weight, ((0, Kp - K), (0, Dp - D))))
            wt = wpad.T  # (Dp, Kp): one fused pad+transpose, amortized over all tiles
            try:
                out = _call_resident(xp, wt, B, Dp, Kp, tm_res, out_dtype,
                                     vmem_limit, single_buffer_w=True)
            except Exception:
                # pipeline_mode=pl.Buffered(1) unsupported on this jax version;
                # the footprint was gated with 2 W buffers, so this still fits.
                out = _call_resident(xp, wt, B, Dp, Kp, tm_res, out_dtype,
                                     vmem_limit, single_buffer_w=False)
            return out if Kp == K else out[:, :K]

    # ------------------------------------------------------------ tiled path
    tn_eff = min(tn if tn is not None else _DEFAULT_TN, Kp)
    tn_eff = max(128, _round_up(tn_eff, 128))
    tn_eff = min(tn_eff, Kp)

    # v7x: make sure the two "parallel" axes expose >= 2 blocks total.
    if is_v7 and B >= 64 and pl.cdiv(B, tm_eff) * pl.cdiv(Kp, tn_eff) < 2:
        tm_eff = max(8, _round_up(pl.cdiv(B, 2), 8))

    if tk is not None:
        tk_eff = min(max(128, _round_up(tk, 128)), Dp)
        Dp_t = _round_up(D, tk_eff)
    else:
        Dp_t, tk_eff = _choose_dp_tk(D, Dp, tm_eff, tn_eff, itemsize, budget)

    xp = x if Dp_t == D else jnp.pad(x, ((0, 0), (0, Dp_t - D)))
    wpad = (weight if (Kp == K and Dp_t == D)
            else jnp.pad(weight, ((0, Kp - K), (0, Dp_t - D))))
    wt = wpad.T  # (Dp_t, Kp)

    out = _call_tiled(xp, wt, B, Dp_t, Kp, tm_eff, tn_eff, tk_eff,
                      out_dtype, vmem_limit)
    return out if Kp == K else out[:, :K]


def make_orthogonal_weight(key, dict_size: int, input_dim: int) -> jax.Array:
    """Deterministic Stiefel point: W (dict_size, input_dim), W @ W.T = I.

    Mirrors torch.nn.utils.parametrizations.orthogonal's effective weight
    (orthonormal rows for dict_size <= input_dim). The parametrization itself
    is a parameter constraint done in plain JAX, not part of the forward on x.
    """
    a = jax.random.normal(key, (input_dim, dict_size), dtype=jnp.float32)
    q, _ = jnp.linalg.qr(a)          # (input_dim, dict_size), orthonormal cols
    return q.T                       # (dict_size, input_dim), orthonormal rows


if __name__ == "__main__":
    # Small shapes consistent with the module.
    input_dim, dict_size, batch = 32, 16, 8
    key = jax.random.PRNGKey(0)
    kx, kw, kx2, kw2 = jax.random.split(key, 4)

    x = jax.random.normal(kx, (batch, input_dim), dtype=jnp.float32)
    weight = make_orthogonal_weight(kw, dict_size, input_dim)
    y_ref = x @ weight.T

    # Path 1: resident-W fast path (W VMEM-resident, streaming batch tiles).
    y = jax.block_until_ready(stiefel_dictionary_forward(x, weight))
    assert y.shape == (batch, dict_size)
    assert jnp.allclose(y, y_ref, atol=1e-5, rtol=1e-5)

    # Path 2a: tiled, single full-D reduction block (no accumulator).
    y_t = jax.block_until_ready(
        stiefel_dictionary_forward(x, weight, force_tiled=True))
    assert jnp.allclose(y_t, y_ref, atol=1e-5, rtol=1e-5)

    # Path 2b: tiled with a multi-block reduction (exercises the accumulator).
    b2, d2, k2 = 16, 384, 192
    x2 = jax.random.normal(kx2, (b2, d2), dtype=jnp.float32)
    w2 = make_orthogonal_weight(kw2, k2, d2)
    y2_ref = x2 @ w2.T
    y2 = jax.block_until_ready(
        stiefel_dictionary_forward(x2, w2, force_tiled=True, tk=128))
    assert y2.shape == (b2, k2)
    assert jnp.allclose(y2, y2_ref, atol=1e-3, rtol=1e-3)

    # Optional bf16 MXU inputs (v6e/v7x) with f32 accumulation.
    y_bf16 = jax.block_until_ready(
        stiefel_dictionary_forward(x, weight, compute_dtype=jnp.bfloat16))
    assert jnp.allclose(y_bf16, y_ref, atol=0.1, rtol=0.05)

    # Sanity: W really lies on the Stiefel manifold (orthonormal rows).
    assert jnp.allclose(weight @ weight.T, jnp.eye(dict_size), atol=1e-5)

    print("KERNEL_OK")
</pallas_src>

<mosaic_0001>
module attributes {stable_mosaic.version = 11 : i64} {
  func.func @_resident_w_kernel(%arg0: i32, %arg1: memref<8x128xf32, #tpu.memory_space<vmem>>, %arg2: memref<128x128xf32, #tpu.memory_space<vmem>>, %arg3: memref<8x128xf32, #tpu.memory_space<vmem>>) attributes {dimension_semantics = [#tpu.dimension_semantics<parallel>], iteration_bounds = array<i64: 1>, scalar_prefetch = 0 : i64, scratch_operands = 0 : i64, tpu.core_type = #tpu.core_type<tc>, window_params = [{transform_indices = @transform_0, window_bounds = array<i64: 8, 128>}, {pipeline_mode = #tpu.pipeline_mode<synchronous>, transform_indices = @transform_1, window_bounds = array<i64: 128, 128>}, {transform_indices = @transform_2, window_bounds = array<i64: 8, 128>}]} {
    %c0 = arith.constant 0 : index
    %c0_0 = arith.constant 0 : index
    %0 = vector.load %arg1[%c0, %c0_0] : memref<8x128xf32, #tpu.memory_space<vmem>>, vector<8x128xf32>
    %c0_1 = arith.constant 0 : index
    %c0_2 = arith.constant 0 : index
    %1 = vector.load %arg2[%c0_1, %c0_2] : memref<128x128xf32, #tpu.memory_space<vmem>>, vector<128x128xf32>
    %cst = arith.constant dense<0.000000e+00> : vector<8x128xf32>
    %2 = tpu.matmul %0, %1, %cst {dimension_numbers = #tpu.dot_dimension_numbers<[1], [0], [0], [1], [0, 0, 1, 1], [], []>} : vector<8x128xf32>, vector<128x128xf32>, vector<8x128xf32> -> vector<8x128xf32>
    %c0_3 = arith.constant 0 : index
    %c0_4 = arith.constant 0 : index
    %3 = vector.load %arg3[%c0_3, %c0_4] : memref<8x128xf32, #tpu.memory_space<vmem>>, vector<8x128xf32>
    tpu.vector_store %arg3[%c0_3, %c0_4], %2 {strides = array<i32>} : memref<8x128xf32, #tpu.memory_space<vmem>>, vector<8x128xf32>,
    return
  }
  func.func @transform_0(%arg0: i32) -> (i32, i32) {
    %c0_i32 = arith.constant 0 : i32
    %c0_i32_0 = arith.constant 0 : i32
    return %arg0, %c0_i32 : i32, i32
  }
  func.func @transform_1(%arg0: i32) -> (i32, i32) {
    %c0_i32 = arith.constant 0 : i32
    %c0_i32_0 = arith.constant 0 : i32
    %c0_i32_1 = arith.constant 0 : i32
    return %c0_i32, %c0_i32_0 : i32, i32
  }
  func.func @transform_2(%arg0: i32) -> (i32, i32) {
    %c0_i32 = arith.constant 0 : i32
    %c0_i32_0 = arith.constant 0 : i32
    return %arg0, %c0_i32 : i32, i32
  }
}

module attributes {stable_mosaic.version = 11 : i64} {
  func.func @_resident_w_kernel(%arg0: i32, %arg1: memref<8x128xf32, #tpu.memory_space<vmem>>, %arg2: memref<128x128xf32, #tpu.memory_space<vmem>>, %arg3: memref<8x128xf32, #tpu.memory_space<vmem>>) attributes {dimension_semantics = [#tpu.dimension_semantics<parallel>], iteration_bounds = array<i64: 1>, scalar_prefetch = 0 : i64, scratch_operands = 0 : i64, tpu.core_type = #tpu.core_type<tc>, window_params = [{transform_indices = @transform_0, window_bounds = array<i64: 8, 128>}, {pipeline_mode = #tpu.pipeline_mode<synchronous>, transform_indices = @transform_1, window_bounds = array<i64: 128, 128>}, {transform_indices = @transform_2, window_bounds = array<i64: 8, 128>}]} {
    %c0 = arith.constant 0 : index
    %c0_0 = arith.constant 0 : index
    %0 = vector.load %arg1[%c0, %c0_0] : memref<8x128xf32, #tpu.memory_space<vmem>>, vector<8x128xf32>
    %c0_1 = arith.constant 0 : index
    %c0_2 = arith.constant 0 : index
    %1 = vector.load %arg2[%c0_1, %c0_2] : memref<128x128xf32, #tpu.memory_space<vmem>>, vector<128x128xf32>
    %cst = arith.constant dense<0.000000e+00> : vector<8x128xf32>
    %2 = tpu.matmul %0, %1, %cst {dimension_numbers = #tpu.dot_dimension_numbers<[1], [0], [0], [1], [0, 0, 1, 1], [], []>} : vector<8x128xf32>, vector<128x128xf32>, vector<8x128xf32> -> vector<8x128xf32>
    %c0_3 = arith.constant 0 : index
    %c0_4 = arith.constant 0 : index
    %3 = vector.load %arg3[%c0_3, %c0_4] : memref<8x128xf32, #tpu.memory_space<vmem>>, vector<8x128xf32>
    tpu.vector_store %arg3[%c0_3, %c0_4], %2 {strides = array<i32>} : memref<8x128xf32, #tpu.memory_space<vmem>>, vector<8x128xf32>,
    return
  }
  func.func @transform_0(%arg0: i32) -> (i32, i32) {
    %c0_i32 = arith.constant 0 : i32
    %c0_i32_0 = arith.constant 0 : i32
    return %arg0, %c0_i32 : i32, i32
  }
  func.func @transform_1(%arg0: i32) -> (i32, i32) {
    %c0_i32 = arith.constant 0 : i32
    %c0_i32_0 = arith.constant 0 : i32
    %c0_i32_1 = arith.constant 0 : i32
    return %c0_i32, %c0_i32_0 : i32, i32
  }
  func.func @transform_2(%arg0: i32) -> (i32, i32) {
    %c0_i32 = arith.constant 0 : i32
    %c0_i32_0 = arith.constant 0 : i32
    return %arg0, %c0_i32 : i32, i32
  }
}

</mosaic_0001>

<bundles_post_ra>
// kernel: tpu_custom_call.1
= control target key start
LH: loop header
LB: loop body
LE: loop exit
PB: predicated region body
PF: predicated region fallthrough
CT: control target
= control target key end

     0   :  { %7 = vsyncpa [#allocation3], 0  ;;  %s364_s0 = inlined_call_operand.hbm [shape: f32[8,128], index: 0, kind: input, shape index: {}]   ;;  %s365_s1 = inlined_call_operand.hbm [shape: f32[128,128], index: 1, kind: input, shape index: {}]   ;;  %s366_s2 = inlined_call_operand.hbm [shape: f32[8,128], index: 2, kind: output, shape index: {}]  }
   0x1   :  { %8 = vsyncpa [#allocation6], 0 }
   0x2   :  { %9 = vsyncpa [#allocation4], 0  ;;  %s298_s9 = smov [#allocation2]   ;;  %s299_s11 = smov [#allocation5]  }
   0x3   :  { %s16_s10 = sshll.u32 %s298_s9, 4  ;;  %s25_s12 = sshll.u32 %s299_s11, 4  ;;  %s17_s10 = int_to_ptr.vmem [resolvable:$true] %s16_s10  ;;  %s321_s12 = int_to_ptr.vmem [resolvable:$true] %s25_s12 }
   0x4   :  { %s226_s15 = scalar_lea.hbm %s364_s0, 128 }
   0x5   :  { %p227_p0 = scmp.ne.s32.totalorder %s364_s0, %s226_s15  ;;  %p230_p1 = scmp.lt.u32.totalorder %s226_s15, %s364_s0 }
   0x7   :  { %p232_p2 = pnand %p230_p1, %p227_p0 }
   0x9   :  { %235 = shalt.err (!%p232_p2)
}
   0xa   :  { %s236_s20 = scalar_lea.vmem %s17_s10, 128  ;;  %p241_p4 = scmp.lt.s32.totalorder %s17_s10, %s17_s10 }
   0xb   :  { %p237_p3 = scmp.ne.s32.totalorder %s17_s10, %s236_s20  ;;  %p242_p5 = scmp.lt.s32.totalorder %s236_s20, %s236_s20 }
   0xd   :  { %p243_p6 = por %p242_p5, %p241_p4 }
   0xf   :  { %p244_p7 = pnand %p243_p6, %p237_p3 }
  0x11   :  { %247 = shalt.err (!%p244_p7)
}
  0x12   :  { %19 = dma.hbm_to_vmem [thread:$0]  %s364_s0, 128, %s17_s10, [#allocation3]  }
  0x13   :  { %s248_s25 = scalar_lea.hbm %s365_s1, 2048 }
  0x14   :  { %p249_p8 = scmp.ne.s32.totalorder %s365_s1, %s248_s25  ;;  %p252_p9 = scmp.lt.u32.totalorder %s248_s25, %s365_s1 }
  0x16   :  { %p254_p10 = pnand %p252_p9, %p249_p8 }
  0x18   :  { %257 = shalt.err (!%p254_p10)
}
  0x19   :  { %s258_s30 = scalar_lea.vmem %s321_s12, 2048  ;;  %p263_p12 = scmp.lt.s32.totalorder %s321_s12, %s321_s12 }
  0x1a   :  { %p259_p11 = scmp.ne.s32.totalorder %s321_s12, %s258_s30  ;;  %p264_p13 = scmp.lt.s32.totalorder %s258_s30, %s258_s30 }
  0x1c   :  { %p265_p0 = por %p264_p13, %p263_p12 }
  0x1e   :  { %p266_p1 = pnand %p265_p0, %p259_p11 }
  0x20   :  { %269 = shalt.err (!%p266_p1)
}
  0x21   :  { %s300_s0 = smov 128   ;;  %s301_s3 = smov 8  }
  0x22   :  { %31 = dma.hbm_to_vmem [thread:$0]  %s365_s1, 2048, %s321_s12, [#allocation6], %s300_s0, %s300_s0, %s301_s3  }
  0x23   :  { %292 = dma.done.wait [#allocation3], 128  }
  0x24   :  { %293 = vsyncadd [#allocation3], 4294967168 }
  0x25   :  { %294 = dma.done.wait [#allocation6], 2048  }
  0x26   :  { %295 = vsyncadd [#allocation6], 4294965248  ;;  %v302_v0 = vmov 0.0|0.0   ;;  %vm303_vm0 = vmmov 0   ;;  %v304_v1 = vmov 0.0   ;;  %v39_v2 = vld [vmem:[#allocation5] sm:$0xff] }
  0x27   :  { %194 = vmatprep.subr.bf16.mxu0 %v302_v0  ;;  %191 = vmatprep.mubr.msk.f32.mxu0 %vm303_vm0, %v304_v1  ;;  %v40_v3 = vld [vmem:[#allocation5 + $0x8] sm:$0xff]  ;;  %v41_v4 = vld [vmem:[#allocation5 + $0x10] sm:$0xff]  ;;  %v42_v6 = vld [vmem:[#allocation5 + $0x18] sm:$0xff]  ;;  %s305_s1 = smov [#allocation7]  }
  0x28   :  { %v195_v5 = vpack.c.bf16 %v40_v3, %v39_v2  ;;  %v198_v7 = vpack.c.bf16 %v42_v6, %v41_v4  ;;  %v43_v8 = vld [vmem:[#allocation5 + $0x20] sm:$0xff]  ;;  %v44_v9 = vld [vmem:[#allocation5 + $0x28] sm:$0xff]  ;;  %v45_v11 = vld [vmem:[#allocation5 + $0x30] sm:$0xff]  ;;  %s132_s6 = sshll.u32 %s305_s1, 4  ;;  %s133_s6 = int_to_ptr.vmem [resolvable:$true] %s132_s6 }
  0x29   :  { %v201_v10 = vpack.c.bf16 %v44_v9, %v43_v8  ;;  %v46_v12 = vld [vmem:[#allocation5 + $0x38] sm:$0xff]  ;;  %v47_v14 = vld [vmem:[#allocation5 + $0x40] sm:$0xff]  ;;  %v48_v15 = vld [vmem:[#allocation5 + $0x48] sm:$0xff]  ;;  %s270_s7 = scalar_lea.vmem %s133_s6, 128  ;;  %p275_p3 = scmp.lt.s32.totalorder %s133_s6, %s133_s6 }
  0x2a   :  { %196 = vmatpush3.bf16.msra.mxu0 %v195_v5  ;;  %v204_v13 = vpack.c.bf16 %v46_v12, %v45_v11  ;;  %v207_v16 = vpack.c.bf16 %v48_v15, %v47_v14  ;;  %v49_v17 = vld [vmem:[#allocation5 + $0x50] sm:$0xff]  ;;  %v50_v18 = vld [vmem:[#allocation5 + $0x58] sm:$0xff]  ;;  %v51_v20 = vld [vmem:[#allocation5 + $0x60] sm:$0xff]  ;;  %p271_p2 = scmp.ne.s32.totalorder %s133_s6, %s270_s7  ;;  %p276_p4 = scmp.lt.s32.totalorder %s270_s7, %s270_s7 }
  0x2b   :  { %197 = vmatprep.subr.bf16.mxu0 %v302_v0  ;;  %v210_v19 = vpack.c.bf16 %v50_v18, %v49_v17  ;;  %v52_v21 = vld [vmem:[#allocation5 + $0x68] sm:$0xff]  ;;  %v53_v23 = vld [vmem:[#allocation5 + $0x70] sm:$0xff]  ;;  %v54_v24 = vld [vmem:[#allocation5 + $0x78] sm:$0xff] }
  0x2c   :  { %v213_v22 = vpack.c.bf16 %v52_v21, %v51_v20  ;;  %v216_v25 = vpack.c.bf16 %v54_v24, %v53_v23  ;;  %v38_v26 = vld [vmem:[#allocation2] sm:$0xff]  ;;  %p277_p5 = por %p276_p4, %p275_p3 }
  0x2e   :  { %199 = vmatpush3.bf16.msra.mxu0 %v198_v7  ;;  %p278_p6 = pnand %p277_p5, %p271_p2 }
  0x2f   :  { %200 = vmatprep.subr.bf16.mxu0 %v302_v0 }
  0x32   :  { %202 = vmatpush3.bf16.msra.mxu0 %v201_v10 }
  0x33   :  { %203 = vmatprep.subr.bf16.mxu0 %v302_v0 }
  0x36   :  { %205 = vmatpush3.bf16.msra.mxu0 %v204_v13 }
  0x37   :  { %206 = vmatprep.subr.bf16.mxu0 %v302_v0 }
  0x3a   :  { %208 = vmatpush3.bf16.msra.mxu0 %v207_v16 }
  0x3b   :  { %209 = vmatprep.subr.bf16.mxu0 %v302_v0 }
  0x3e   :  { %211 = vmatpush3.bf16.msra.mxu0 %v210_v19 }
  0x3f   :  { %212 = vmatprep.subr.bf16.mxu0 %v302_v0 }
  0x42   :  { %214 = vmatpush3.bf16.msra.mxu0 %v213_v22 }
  0x43   :  { %215 = vmatprep.subr.bf16.mxu0 %v302_v0 }
  0x46   :  { %217 = vmatpush3.bf16.msra.mxu0 %v216_v25 }
  0x49   :  { %192 = vmatmul.mubr.f32.vlgmr.msra.gmra.mrb[0].mxu0 %v38_v26 }
 0x11c   :  { %v121_v27 = vpop.f32.mrb[0].mxu0 }
 0x11d   :  { %125 = vst [vmem:[#allocation7] sm:$0xff] %v121_v27  ;;  %v193_v28 = vpop.f32.mrb[1].mxu0 }
 0x11e   :  { %281 = shalt.err (!%p278_p6)
}
 0x11f   :  { %s282_s10 = scalar_lea.hbm %s366_s2, 128 }
 0x120   :  { %p283_p7 = scmp.ne.s32.totalorder %s366_s2, %s282_s10  ;;  %p286_p8 = scmp.lt.u32.totalorder %s282_s10, %s366_s2 }
 0x122   :  { %p288_p9 = pnand %p286_p8, %p283_p7 }
 0x124   :  { %291 = shalt.err (!%p288_p9)
}
 0x125   :  { %135 = dma.vmem_to_hbm [thread:$0]  %s133_s6, 128, %s366_s2, [#allocation4]  }
 0x126   :  { %296 = dma.done.wait [#allocation4], 128  }
 0x127   :  { %297 = vsyncadd [#allocation4], 4294967168 }
 0x128   :  { %139 = vsyncpa [#allocation3], 1 }
 0x129   :  { %140 = vsyncpa [#allocation6], 1 }
 0x12a   :  { %141 = vsyncpa [#allocation4], 1 }

// kernel: tpu_custom_call.1
= control target key start
LH: loop header
LB: loop body
LE: loop exit
PB: predicated region body
PF: predicated region fallthrough
CT: control target
= control target key end

     0   :  { %7 = vsyncpa [#allocation3], 0  ;;  %s364_s0 = inlined_call_operand.hbm [shape: f32[8,128], index: 0, kind: input, shape index: {}]   ;;  %s365_s1 = inlined_call_operand.hbm [shape: f32[128,128], index: 1, kind: input, shape index: {}]   ;;  %s366_s2 = inlined_call_operand.hbm [shape: f32[8,128], index: 2, kind: output, shape index: {}]  }
   0x1   :  { %8 = vsyncpa [#allocation6], 0 }
   0x2   :  { %9 = vsyncpa [#allocation4], 0  ;;  %s298_s9 = smov [#allocation2]   ;;  %s299_s11 = smov [#allocation5]  }
   0x3   :  { %s16_s10 = sshll.u32 %s298_s9, 4  ;;  %s25_s12 = sshll.u32 %s299_s11, 4  ;;  %s17_s10 = int_to_ptr.vmem [resolvable:$true] %s16_s10  ;;  %s321_s12 = int_to_ptr.vmem [resolvable:$true] %s25_s12 }
   0x4   :  { %s226_s15 = scalar_lea.hbm %s364_s0, 128 }
   0x5   :  { %p227_p0 = scmp.ne.s32.totalorder %s364_s0, %s226_s15  ;;  %p230_p1 = scmp.lt.u32.totalorder %s226_s15, %s364_s0 }
   0x7   :  { %p232_p2 = pnand %p230_p1, %p227_p0 }
   0x9   :  { %235 = shalt.err (!%p232_p2)
}
   0xa   :  { %s236_s20 = scalar_lea.vmem %s17_s10, 128  ;;  %p241_p4 = scmp.lt.s32.totalorder %s17_s10, %s17_s10 }
   0xb   :  { %p237_p3 = scmp.ne.s32.totalorder %s17_s10, %s236_s20  ;;  %p242_p5 = scmp.lt.s32.totalorder %s236_s20, %s236_s20 }
   0xd   :  { %p243_p6 = por %p242_p5, %p241_p4 }
   0xf   :  { %p244_p7 = pnand %p243_p6, %p237_p3 }
  0x11   :  { %247 = shalt.err (!%p244_p7)
}
  0x12   :  { %19 = dma.hbm_to_vmem [thread:$0]  %s364_s0, 128, %s17_s10, [#allocation3]  }
  0x13   :  { %s248_s25 = scalar_lea.hbm %s365_s1, 2048 }
  0x14   :  { %p249_p8 = scmp.ne.s32.totalorder %s365_s1, %s248_s25  ;;  %p252_p9 = scmp.lt.u32.totalorder %s248_s25, %s365_s1 }
  0x16   :  { %p254_p10 = pnand %p252_p9, %p249_p8 }
  0x18   :  { %257 = shalt.err (!%p254_p10)
}
  0x19   :  { %s258_s30 = scalar_lea.vmem %s321_s12, 2048  ;;  %p263_p12 = scmp.lt.s32.totalorder %s321_s12, %s321_s12 }
  0x1a   :  { %p259_p11 = scmp.ne.s32.totalorder %s321_s12, %s258_s30  ;;  %p264_p13 = scmp.lt.s32.totalorder %s258_s30, %s258_s30 }
  0x1c   :  { %p265_p0 = por %p264_p13, %p263_p12 }
  0x1e   :  { %p266_p1 = pnand %p265_p0, %p259_p11 }
  0x20   :  { %269 = shalt.err (!%p266_p1)
}
  0x21   :  { %s300_s0 = smov 128   ;;  %s301_s3 = smov 8  }
  0x22   :  { %31 = dma.hbm_to_vmem [thread:$0]  %s365_s1, 2048, %s321_s12, [#allocation6], %s300_s0, %s300_s0, %s301_s3  }
  0x23   :  { %292 = dma.done.wait [#allocation3], 128  }
  0x24   :  { %293 = vsyncadd [#allocation3], 4294967168 }
  0x25   :  { %294 = dma.done.wait [#allocation6], 2048  }
  0x26   :  { %295 = vsyncadd [#allocation6], 4294965248  ;;  %v302_v0 = vmov 0.0|0.0   ;;  %vm303_vm0 = vmmov 0   ;;  %v304_v1 = vmov 0.0   ;;  %v39_v2 = vld [vmem:[#allocation5] sm:$0xff] }
  0x27   :  { %194 = vmatprep.subr.bf16.mxu0 %v302_v0  ;;  %191 = vmatprep.mubr.msk.f32.mxu0 %vm303_vm0, %v304_v1  ;;  %v40_v3 = vld [vmem:[#allocation5 + $0x8] sm:$0xff]  ;;  %v41_v4 = vld [vmem:[#allocation5 + $0x10] sm:$0xff]  ;;  %v42_v6 = vld [vmem:[#allocation5 + $0x18] sm:$0xff]  ;;  %s305_s1 = smov [#allocation7]  }
  0x28   :  { %v195_v5 = vpack.c.bf16 %v40_v3, %v39_v2  ;;  %v198_v7 = vpack.c.bf16 %v42_v6, %v41_v4  ;;  %v43_v8 = vld [vmem:[#allocation5 + $0x20] sm:$0xff]  ;;  %v44_v9 = vld [vmem:[#allocation5 + $0x28] sm:$0xff]  ;;  %v45_v11 = vld [vmem:[#allocation5 + $0x30] sm:$0xff]  ;;  %s132_s6 = sshll.u32 %s305_s1, 4  ;;  %s133_s6 = int_to_ptr.vmem [resolvable:$true] %s132_s6 }
  0x29   :  { %v201_v10 = vpack.c.bf16 %v44_v9, %v43_v8  ;;  %v46_v12 = vld [vmem:[#allocation5 + $0x38] sm:$0xff]  ;;  %v47_v14 = vld [vmem:[#allocation5 + $0x40] sm:$0xff]  ;;  %v48_v15 = vld [vmem:[#allocation5 + $0x48] sm:$0xff]  ;;  %s270_s7 = scalar_lea.vmem %s133_s6, 128  ;;  %p275_p3 = scmp.lt.s32.totalorder %s133_s6, %s133_s6 }
  0x2a   :  { %196 = vmatpush3.bf16.msra.mxu0 %v195_v5  ;;  %v204_v13 = vpack.c.bf16 %v46_v12, %v45_v11  ;;  %v207_v16 = vpack.c.bf16 %v48_v15, %v47_v14  ;;  %v49_v17 = vld [vmem:[#allocation5 + $0x50] sm:$0xff]  ;;  %v50_v18 = vld [vmem:[#allocation5 + $0x58] sm:$0xff]  ;;  %v51_v20 = vld [vmem:[#allocation5 + $0x60] sm:$0xff]  ;;  %p271_p2 = scmp.ne.s32.totalorder %s133_s6, %s270_s7  ;;  %p276_p4 = scmp.lt.s32.totalorder %s270_s7, %s270_s7 }
  0x2b   :  { %197 = vmatprep.subr.bf16.mxu0 %v302_v0  ;;  %v210_v19 = vpack.c.bf16 %v50_v18, %v49_v17  ;;  %v52_v21 = vld [vmem:[#allocation5 + $0x68] sm:$0xff]  ;;  %v53_v23 = vld [vmem:[#allocation5 + $0x70] sm:$0xff]  ;;  %v54_v24 = vld [vmem:[#allocation5 + $0x78] sm:$0xff] }
  0x2c   :  { %v213_v22 = vpack.c.bf16 %v52_v21, %v51_v20  ;;  %v216_v25 = vpack.c.bf16 %v54_v24, %v53_v23  ;;  %v38_v26 = vld [vmem:[#allocation2] sm:$0xff]  ;;  %p277_p5 = por %p276_p4, %p275_p3 }
  0x2e   :  { %199 = vmatpush3.bf16.msra.mxu0 %v198_v7  ;;  %p278_p6 = pnand %p277_p5, %p271_p2 }
  0x2f   :  { %200 = vmatprep.subr.bf16.mxu0 %v302_v0 }
  0x32   :  { %202 = vmatpush3.bf16.msra.mxu0 %v201_v10 }
  0x33   :  { %203 = vmatprep.subr.bf16.mxu0 %v302_v0 }
  0x36   :  { %205 = vmatpush3.bf16.msra.mxu0 %v204_v13 }
  0x37   :  { %206 = vmatprep.subr.bf16.mxu0 %v302_v0 }
  0x3a   :  { %208 = vmatpush3.bf16.msra.mxu0 %v207_v16 }
  0x3b   :  { %209 = vmatprep.subr.bf16.mxu0 %v302_v0 }
  0x3e   :  { %211 = vmatpush3.bf16.msra.mxu0 %v210_v19 }
  0x3f   :  { %212 = vmatprep.subr.bf16.mxu0 %v302_v0 }
  0x42   :  { %214 = vmatpush3.bf16.msra.mxu0 %v213_v22 }
  0x43   :  { %215 = vmatprep.subr.bf16.mxu0 %v302_v0 }
  0x46   :  { %217 = vmatpush3.bf16.msra.mxu0 %v216_v25 }
  0x49   :  { %192 = vmatmul.mubr.f32.vlgmr.msra.gmra.mrb[0].mxu0 %v38_v26 }
 0x11c   :  { %v121_v27 = vpop.f32.mrb[0].mxu0 }
 0x11d   :  { %125 = vst [vmem:[#allocation7] sm:$0xff] %v121_v27  ;;  %v193_v28 = vpop.f32.mrb[1].mxu0 }
 0x11e   :  { %281 = shalt.err (!%p278_p6)
}
 0x11f   :  { %s282_s10 = scalar_lea.hbm %s366_s2, 128 }
 0x120   :  { %p283_p7 = scmp.ne.s32.totalorder %s366_s2, %s282_s10  ;;  %p286_p8 = scmp.lt.u32.totalorder %s282_s10, %s366_s2 }
 0x122   :  { %p288_p9 = pnand %p286_p8, %p283_p7 }
 0x124   :  { %291 = shalt.err (!%p288_p9)
}
 0x125   :  { %135 = dma.vmem_to_hbm [thread:$0]  %s133_s6, 128, %s366_s2, [#allocation4]  }
 0x126   :  { %296 = dma.done.wait [#allocation4], 128  }
 0x127   :  { %297 = vsyncadd [#allocation4], 4294967168 }
 0x128   :  { %139 = vsyncpa [#allocation3], 1 }
 0x129   :  { %140 = vsyncpa [#allocation6], 1 }
 0x12a   :  { %141 = vsyncpa [#allocation4], 1 }

</bundles_post_ra>
